<compile_context>
chip_gen: v5e
topology: v5e:2x2
jax: 0.10.0
libtpu: 0.0.40
codegen_flags: <defaults>
</compile_context>

<pallas_src>
import math
import jax
import jax.numpy as jnp
from jax.experimental import pallas as pl
from jax.experimental.pallas import tpu as pltpu


_VMEM_SPEC = pl.BlockSpec(memory_space=pltpu.MemorySpace.VMEM)
_SMEM_SPEC = pl.BlockSpec(memory_space=pltpu.MemorySpace.SMEM)
_ANY_SPEC = pl.BlockSpec(memory_space=pl.ANY)


# ----------------------------------------------------------------------------
# Pallas kernels
# ----------------------------------------------------------------------------
def _gather_kernel(idx_ref, ce_hbm, out_ref, sem):
    """DMA row gather: out[b, :] = class_embedding_flat[idx[b], :].

    idx_ref : SMEM (B,) int32 flat row indices (b * num_classes + label)
    ce_hbm  : HBM (B*C, H) class embedding table (never pulled into VMEM)
    out_ref : VMEM (B, H) output
    sem     : DMA semaphores, one per row (all B copies run concurrently)
    """
    B = out_ref.shape[0]
    for b in range(B):
        pltpu.make_async_copy(ce_hbm.at[pl.ds(idx_ref[b], 1), :],
                              out_ref.at[pl.ds(b, 1), :],
                              sem.at[b]).start()
    for b in range(B):
        pltpu.make_async_copy(ce_hbm.at[pl.ds(idx_ref[b], 1), :],
                              out_ref.at[pl.ds(b, 1), :],
                              sem.at[b]).wait()


def _gate_fused_kernel(x_ref, w_ref, b_ref, out_ref):
    """Fused GateNN combine on pre-stacked input.

    x_ref  : (R, 3H) f32  — rows are [op | left | right]
    w_ref  : (3H, 2H) bf16 — [Wh | Wg] fused (halves MXU pushes, doubles lanes)
    b_ref  : (1, 2H) f32   — [bh | bg]
    out_ref: (R, H)  f32   — tanh(h) * sigmoid(g)
    """
    H = out_ref.shape[-1]
    x = x_ref[...].astype(w_ref.dtype)                 # bf16 at the MXU input
    acc = jnp.dot(x, w_ref[...], preferred_element_type=jnp.float32)
    acc = acc + b_ref[...]                              # f32 accumulation
    h = jnp.tanh(acc[:, :H])                            # EUP, f32 (v5e-safe)
    g = jax.nn.sigmoid(acc[:, H:])
    out_ref[...] = (h * g).astype(out_ref.dtype)
    # Note: at production H (multiple of 64/128) the split and the store are
    # lane-aligned / lane-dense; at tiny demo H=32 they are masked but tiny.


# ----------------------------------------------------------------------------
# Pallas wrappers
# ----------------------------------------------------------------------------
@jax.jit
def _gather_call(class_embedding, idx):
    """labels_embedding[b] = class_embedding[b, idx[b]] via DMA row gather."""
    B, C, H = class_embedding.shape
    ce_flat = class_embedding.reshape(B * C, H)         # free bitcast reshape
    flat_idx = idx.astype(jnp.int32) + jnp.arange(B, dtype=jnp.int32) * C
    return pl.pallas_call(
        _gather_kernel,
        out_shape=jax.ShapeDtypeStruct((B, H), class_embedding.dtype),
        in_specs=[_SMEM_SPEC, _ANY_SPEC],
        out_specs=_VMEM_SPEC,
        scratch_shapes=[pltpu.SemaphoreType.DMA((B,))],
    )(flat_idx, ce_flat)


@jax.jit
def _merge_rows(op, left, right, w, b):
    """Batched GateNN combine for R independent (op, left, right) triples."""
    R, H = op.shape
    x = jnp.concatenate([op, left, right], axis=-1)     # (R, 3H)
    Rp = max(8, ((R + 7) // 8) * 8)                     # full sublane groups
    if Rp != R:
        x = jnp.pad(x, ((0, Rp - R), (0, 0)))
    out = pl.pallas_call(
        _gate_fused_kernel,
        out_shape=jax.ShapeDtypeStruct((Rp, H), jnp.float32),
        in_specs=[_VMEM_SPEC, _VMEM_SPEC, _VMEM_SPEC],
        out_specs=_VMEM_SPEC,
    )(x, w, b)
    return out[:R]


# ----------------------------------------------------------------------------
# Model (mirrors the PyTorch reference; dropout = identity / eval mode)
# ----------------------------------------------------------------------------
class TreeEmbeddingNode:
    def __init__(self, embedding, terminal, commutative):
        self.embedding = embedding
        self.terminal = terminal
        self.commutative = commutative


class TreeEmbeddingModel:
    def __init__(self, hidden_size, op_set, commutative_op_set, key, dropout=0.4):
        self.hidden_size = hidden_size
        self.op_set = set(op_set)
        self.commutative_op_set = set(commutative_op_set)
        # GateNN(combine): single layer, input1_size = 2*H  ->  Linear(3H, H) x 2
        fan_in = 3 * hidden_size
        bound = 1.0 / math.sqrt(fan_in)
        kh_w, kh_b, kg_w, kg_b = jax.random.split(key, 4)
        wh = jax.random.uniform(kh_w, (fan_in, hidden_size), jnp.float32, -bound, bound)
        wg = jax.random.uniform(kg_w, (fan_in, hidden_size), jnp.float32, -bound, bound)
        bh = jax.random.uniform(kh_b, (1, hidden_size), jnp.float32, -bound, bound)
        bg = jax.random.uniform(kg_b, (1, hidden_size), jnp.float32, -bound, bound)
        # Fuse the two gates: one bf16 (3H, 2H) weight + one f32 (1, 2H) bias.
        self.w = jnp.concatenate([wh, wg], axis=1).astype(jnp.bfloat16)
        self.b = jnp.concatenate([bh, bg], axis=1)

    # --- batched combine ----------------------------------------------------
    def _merge_many(self, ops, lefts, rights):
        op = jnp.stack([jnp.reshape(o, (self.hidden_size,)) for o in ops])
        lf = jnp.stack([jnp.reshape(l, (self.hidden_size,)) for l in lefts])
        rt = jnp.stack([jnp.reshape(r, (self.hidden_size,)) for r in rights])
        return _merge_rows(op, lf, rt, self.w, self.b)

    def merge(self, op_embedding, left_embedding, right_embedding):
        # dropout on te_input / op_embedding is identity in eval mode
        return self._merge_many([op_embedding], [left_embedding], [right_embedding])[0]

    # --- forward ------------------------------------------------------------
    def forward(self, class_embedding, tree_stacks, verse_node_stacks,
                embed_node_index, decompose=None):
        idx = jnp.asarray(embed_node_index, dtype=jnp.int32).reshape(-1)
        # Dispatch the DMA gather first (async); the single host sync for the
        # tree bookkeeping below overlaps with the kernel on device.
        labels_embedding = _gather_call(class_embedding, idx)
        node_labels = [int(v) for v in jax.device_get(idx)]

        pending = {}  # batch index -> current right_embedding (device (H,) array)
        for i, node_label in enumerate(node_labels):
            if node_label in self.op_set:
                tree_stacks[i].append(TreeEmbeddingNode(
                    labels_embedding[i], terminal=False,
                    commutative=node_label in self.commutative_op_set))
            else:
                pending[i] = labels_embedding[i]

        # TODO(synk): the commutative/decompose + verse_node_stacks branch needs an
        # external `decompose` module; only the decompose=None path is translated.
        # Batched merge: at each chain depth, all batch elements that are mergeable
        # are combined in a single pallas_call (semantics identical to the per-
        # element while loop since batch elements are independent).
        while True:
            merge_ids = [i for i in pending
                         if len(tree_stacks[i]) >= 2
                         and tree_stacks[i][-1].terminal
                         and not tree_stacks[i][-2].terminal]
            if not merge_ids:
                break
            ops, lefts, rights = [], [], []
            for i in merge_ids:
                lefts.append(tree_stacks[i].pop().embedding)
                ops.append(tree_stacks[i].pop().embedding)
                rights.append(pending[i])
            merged = self._merge_many(ops, lefts, rights)
            for r, i in enumerate(merge_ids):
                pending[i] = merged[r]

        for i in pending:
            tree_stacks[i].append(TreeEmbeddingNode(pending[i], terminal=True,
                                                    commutative=False))
        return labels_embedding


# ----------------------------------------------------------------------------
# Demo
# ----------------------------------------------------------------------------
if __name__ == "__main__":
    key = jax.random.PRNGKey(0)
    B, C, H = 2, 8, 32                       # batch, num_classes, hidden
    op_set = {0, 1}
    commutative_op_set = {0}

    k_model, k_data = jax.random.split(key)
    model = TreeEmbeddingModel(H, op_set, commutative_op_set, k_model)

    class_embedding = jax.random.normal(k_data, (B, C, H), dtype=jnp.float32)

    tree_stacks = [[] for _ in range(B)]
    verse_node_stacks = None

    # step 1: operator nodes (pushed as non-terminal)
    out1 = model.forward(class_embedding, tree_stacks, verse_node_stacks,
                         jnp.array([0, 1], dtype=jnp.int32))
    # step 2: terminal nodes (left children)
    out2 = model.forward(class_embedding, tree_stacks, verse_node_stacks,
                         jnp.array([2, 3], dtype=jnp.int32))
    # step 3: terminal nodes (right children) -> triggers the batched GateNN merge
    out3 = model.forward(class_embedding, tree_stacks, verse_node_stacks,
                         jnp.array([4, 5], dtype=jnp.int32))

    jax.block_until_ready(out3)
    jax.block_until_ready([n.embedding for st in tree_stacks for n in st])

    assert out3.shape == (B, H)
    assert all(len(st) == 1 and st[0].terminal for st in tree_stacks)
    print("KERNEL_OK")
</pallas_src>

<mosaic_0001>
module attributes {stable_mosaic.version = 11 : i64} {
  func.func @_gather_kernel(%arg0: memref<2xi32, #tpu.memory_space<smem>>, %arg1: memref<16x32xf32, #tpu.memory_space<any>>, %arg2: memref<2x32xf32, #tpu.memory_space<vmem>>, %arg3: memref<2x!tpu.dma_semaphore, #tpu.memory_space<semaphore_mem>>) attributes {dimension_semantics = [], scalar_prefetch = 0 : i64, scratch_operands = 1 : i64, tpu.core_type = #tpu.core_type<tc>} {
    %c0 = arith.constant 0 : index
    %0 = memref.load %arg0[%c0] : memref<2xi32, #tpu.memory_space<smem>>
    %c0_i32 = arith.constant 0 : i32
    %c0_i32_0 = arith.constant 0 : i32
    %1 = tpu.memref_slice %arg1[%0, %c0_i32_0] : memref<16x32xf32, #tpu.memory_space<any>> -> memref<1x32xf32, #tpu.memory_space<any>>
    %c0_i32_1 = arith.constant 0 : i32
    %c0_i32_2 = arith.constant 0 : i32
    %2 = tpu.memref_slice %arg2[%c0_i32_1, %c0_i32_2] : memref<2x32xf32, #tpu.memory_space<vmem>> -> memref<1x32xf32, #tpu.memory_space<vmem>>
    %3 = tpu.memref_slice %arg3[%c0_i32] : memref<2x!tpu.dma_semaphore, #tpu.memory_space<semaphore_mem>> -> memref<1x!tpu.dma_semaphore, #tpu.memory_space<semaphore_mem>>
    %4 = tpu.memref_squeeze %3 : memref<1x!tpu.dma_semaphore, #tpu.memory_space<semaphore_mem>> -> memref<!tpu.dma_semaphore, #tpu.memory_space<semaphore_mem>>
    tpu.enqueue_dma source(%1 : memref<1x32xf32, #tpu.memory_space<any>>) target(%2 : memref<1x32xf32, #tpu.memory_space<vmem>>) target_semaphore(%4 : memref<!tpu.dma_semaphore, #tpu.memory_space<semaphore_mem>>)
    %c1 = arith.constant 1 : index
    %5 = memref.load %arg0[%c1] : memref<2xi32, #tpu.memory_space<smem>>
    %c1_i32 = arith.constant 1 : i32
    %c0_i32_3 = arith.constant 0 : i32
    %6 = tpu.memref_slice %arg1[%5, %c0_i32_3] : memref<16x32xf32, #tpu.memory_space<any>> -> memref<1x32xf32, #tpu.memory_space<any>>
    %c1_i32_4 = arith.constant 1 : i32
    %c0_i32_5 = arith.constant 0 : i32
    %7 = tpu.memref_slice %arg2[%c1_i32_4, %c0_i32_5] : memref<2x32xf32, #tpu.memory_space<vmem>> -> memref<1x32xf32, #tpu.memory_space<vmem>>
    %8 = tpu.memref_slice %arg3[%c1_i32] : memref<2x!tpu.dma_semaphore, #tpu.memory_space<semaphore_mem>> -> memref<1x!tpu.dma_semaphore, #tpu.memory_space<semaphore_mem>>
    %9 = tpu.memref_squeeze %8 : memref<1x!tpu.dma_semaphore, #tpu.memory_space<semaphore_mem>> -> memref<!tpu.dma_semaphore, #tpu.memory_space<semaphore_mem>>
    tpu.enqueue_dma source(%6 : memref<1x32xf32, #tpu.memory_space<any>>) target(%7 : memref<1x32xf32, #tpu.memory_space<vmem>>) target_semaphore(%9 : memref<!tpu.dma_semaphore, #tpu.memory_space<semaphore_mem>>)
    %c0_6 = arith.constant 0 : index
    %10 = memref.load %arg0[%c0_6] : memref<2xi32, #tpu.memory_space<smem>>
    %c0_i32_7 = arith.constant 0 : i32
    %c0_i32_8 = arith.constant 0 : i32
    %11 = tpu.memref_slice %arg1[%10, %c0_i32_8] : memref<16x32xf32, #tpu.memory_space<any>> -> memref<1x32xf32, #tpu.memory_space<any>>
    %c0_i32_9 = arith.constant 0 : i32
    %c0_i32_10 = arith.constant 0 : i32
    %12 = tpu.memref_slice %arg2[%c0_i32_9, %c0_i32_10] : memref<2x32xf32, #tpu.memory_space<vmem>> -> memref<1x32xf32, #tpu.memory_space<vmem>>
    %13 = tpu.memref_slice %arg3[%c0_i32_7] : memref<2x!tpu.dma_semaphore, #tpu.memory_space<semaphore_mem>> -> memref<1x!tpu.dma_semaphore, #tpu.memory_space<semaphore_mem>>
    %14 = tpu.memref_squeeze %13 : memref<1x!tpu.dma_semaphore, #tpu.memory_space<semaphore_mem>> -> memref<!tpu.dma_semaphore, #tpu.memory_space<semaphore_mem>>
    tpu.wait_dma2 semaphore(%14 : memref<!tpu.dma_semaphore, #tpu.memory_space<semaphore_mem>>) src(%11 : memref<1x32xf32, #tpu.memory_space<any>>) dst(%12 : memref<1x32xf32, #tpu.memory_space<vmem>>)
    %c1_11 = arith.constant 1 : index
    %15 = memref.load %arg0[%c1_11] : memref<2xi32, #tpu.memory_space<smem>>
    %c1_i32_12 = arith.constant 1 : i32
    %c0_i32_13 = arith.constant 0 : i32
    %16 = tpu.memref_slice %arg1[%15, %c0_i32_13] : memref<16x32xf32, #tpu.memory_space<any>> -> memref<1x32xf32, #tpu.memory_space<any>>
    %c1_i32_14 = arith.constant 1 : i32
    %c0_i32_15 = arith.constant 0 : i32
    %17 = tpu.memref_slice %arg2[%c1_i32_14, %c0_i32_15] : memref<2x32xf32, #tpu.memory_space<vmem>> -> memref<1x32xf32, #tpu.memory_space<vmem>>
    %18 = tpu.memref_slice %arg3[%c1_i32_12] : memref<2x!tpu.dma_semaphore, #tpu.memory_space<semaphore_mem>> -> memref<1x!tpu.dma_semaphore, #tpu.memory_space<semaphore_mem>>
    %19 = tpu.memref_squeeze %18 : memref<1x!tpu.dma_semaphore, #tpu.memory_space<semaphore_mem>> -> memref<!tpu.dma_semaphore, #tpu.memory_space<semaphore_mem>>
    tpu.wait_dma2 semaphore(%19 : memref<!tpu.dma_semaphore, #tpu.memory_space<semaphore_mem>>) src(%16 : memref<1x32xf32, #tpu.memory_space<any>>) dst(%17 : memref<1x32xf32, #tpu.memory_space<vmem>>)
    return
  }
}

</mosaic_0001>

<bundles_post_ra>
// kernel: _gather_call.1
= control target key start
LH: loop header
LB: loop body
LE: loop exit
PB: predicated region body
PF: predicated region fallthrough
CT: control target
= control target key end

     0   :  { %7 = vsyncpa [#allocation5], 0  ;;  %s241_s0 = inlined_call_operand.vmem [shape: s32[2], index: 0, kind: input, shape index: {}]   ;;  %s242_s1 = inlined_call_operand.hbm [shape: f32[16,32], index: 1, kind: input, shape index: {}]   ;;  %s243_s2 = inlined_call_operand.hbm [shape: f32[2,32], index: 2, kind: output, shape index: {}]  }
   0x1   :  { %8 = vsyncpa [#allocation4], 0  ;;  %s14_s11 = sshll.u32 %s241_s0, 4  ;;  %s192_s12 = smov [#allocation3]   ;;  %s15_s11 = int_to_ptr.vmem [resolvable:$true] %s14_s11 }
   0x2   :  { %17 = dma.vmem_to_smem %s15_s11, 16, %s192_s12, [#allocation5]  }
   0x3   :  { %184 = dma.done.wait [#allocation5], 16  }
   0x4   :  { %185 = vsyncadd [#allocation5], 4294967280 }
   0x5   :  { %22 = sfence }
   0x6   :  { %s23_s13 = sld [smem:[#allocation3]]  ;;  %s193_s15 = smov [#allocation6]  }
   0x7   :  { %s94_s14 = sld [smem:[#allocation3 + $0x1]]  ;;  %s213_s16 = sshll.u32 %s193_s15, 4  ;;  %s35_s16 = int_to_ptr.vmem [resolvable:$true] %s213_s16 }
   0x8   :  { %s194_s17 = smov [#allocation6 + $0x1]   ;;  %s116_s30 = scalar_lea.hbm %s242_s1, 16 }
   0x9   :  { %s215_s18 = sshll.u32 %s194_s17, 4  ;;  %s52_s18 = int_to_ptr.vmem [resolvable:$true] %s215_s18 }
   0xc   :  { %s24_s0 = scalar_lea.hbm %s242_s1, %s23_s13 }
   0xd   :  { %s32_s21 = sshll.u32 %s24_s0, 4  ;;  %s39_s24 = scalar_lea.hbm %s242_s1, %s94_s14  ;;  %s33_s21 = int_to_ptr.hbm [resolvable:$true] %s32_s21 }
   0xe   :  { %s49_s25 = sshll.u32 %s39_s24, 4  ;;  %s112_s26 = sshra.s32 %s33_s21, 4  ;;  %s113_s26 = int_to_ptr.hbm [resolvable:$true] %s112_s26  ;;  %s50_s25 = int_to_ptr.hbm [resolvable:$true] %s49_s25 }
   0xf   :  { %s114_s27 = scalar_lea.hbm %s113_s26, 1  ;;  %p117_p1 = scmp.lt.s32.totalorder %s113_s26, %s242_s1 }
  0x10   :  { %p115_p0 = scmp.ne.s32.totalorder %s113_s26, %s114_s27  ;;  %p118_p2 = scmp.lt.s32.totalorder %s116_s30, %s114_s27 }
  0x12   :  { %p119_p3 = por %p118_p2, %p117_p1 }
  0x14   :  { %p120_p4 = pnand %p119_p3, %p115_p0 }
  0x16   :  { %123 = shalt.err (!%p120_p4)  }
  0x17   :  { %37 = dma.hbm_to_vmem [thread:$0]  %s33_s21, 16, %s35_s16, [#allocation2] }
  0x18   :  { %s136_s5 = sshra.s32 %s50_s25, 4  ;;  %s137_s5 = int_to_ptr.hbm [resolvable:$true] %s136_s5 }
  0x19   :  { %s138_s6 = scalar_lea.hbm %s137_s5, 1  ;;  %p141_p6 = scmp.lt.s32.totalorder %s137_s5, %s242_s1 }
  0x1a   :  { %p139_p5 = scmp.ne.s32.totalorder %s137_s5, %s138_s6  ;;  %p142_p7 = scmp.lt.s32.totalorder %s116_s30, %s138_s6 }
  0x1c   :  { %p143_p8 = por %p142_p7, %p141_p6 }
  0x1e   :  { %p144_p9 = pnand %p143_p8, %p139_p5 }
  0x20   :  { %147 = shalt.err (!%p144_p9)  }
  0x21   :  { %54 = dma.hbm_to_vmem [thread:$0]  %s50_s25, 16, %s52_s18, [#allocation2 + $0x1] }
  0x22   :  { %186 = dma.done.wait [#allocation2], 16 }
  0x23   :  { %187 = vsyncadd [#allocation2], 4294967280 }
  0x24   :  { %188 = dma.done.wait [#allocation2 + $0x1], 16 }
  0x25   :  { %189 = vsyncadd [#allocation2 + $0x1], 4294967280  ;;  %s69_s11 = sshll.u32 %s243_s2, 4  ;;  %s70_s11 = int_to_ptr.hbm [resolvable:$true] %s69_s11 }
  0x26   :  { %72 = dma.vmem_to_hbm [thread:$0]  %s35_s16, 32, %s70_s11, [#allocation4]  }
  0x27   :  { %190 = dma.done.wait [#allocation4], 32  }
  0x28   :  { %191 = vsyncadd [#allocation4], 4294967264 }
  0x29   :  { %77 = vsyncpa [#allocation4], 1 }
  0x2a   :  { %78 = vsyncpa [#allocation5], 1 }
  0x2b   :  { %79 = vsyncmov [#allocation2] }
  0x2e   :  { %s80_s1 = vpop.sfrf %79 }
  0x2f   :  { %p95_p10 = scmp.ne.s32.totalorder %s80_s1, 0 }
  0x31   :  { %84 = shalt.err (%p95_p10)  }
  0x32   :  { %86 = vsyncmov [#allocation2 + $0x1] }
  0x35   :  { %s87_s12 = vpop.sfrf %86 }
  0x36   :  { %p96_p11 = scmp.ne.s32.totalorder %s87_s12, 0 }
  0x38   :  { %91 = shalt.err (%p96_p11)  }

</bundles_post_ra>
